<compile_context>
chip_gen: v7x
topology: tpu7x:2x2x1
jax: 0.10.0
libtpu: 0.0.40
codegen_flags: <defaults>
</compile_context>

<pallas_src>
import jax
import jax.numpy as jnp
from jax.experimental import pallas as pl
from jax.experimental.pallas import tpu as pltpu

POWER = 0.2
_LANES = 128
_SUBLANES = 8
_ACC_ROWS = 8                       # fixed accumulator height (one sublane tile)
_TARGET_BLOCK_BYTES = 2 * 1024 * 1024  # ~2 MiB streaming blocks


def _num_tensorcores() -> int:
    """Best-effort TensorCores per chip: 2 on v7x, 1 on v5e/v6e (and fallback)."""
    try:
        kind = jax.devices()[0].device_kind.lower()
        if "v7" in kind:
            return 2
    except Exception:
        pass
    return 1


def _as_2d_view(x: jax.Array) -> jax.Array:
    """2-D (rows, cols) view of x, avoiding an HBM relayout whenever possible."""
    if x.ndim >= 2:
        cols = x.shape[-1]
        itemsize = x.dtype.itemsize
        # Lane-usable trailing dim and a sane minimum-block size: collapse only
        # the leading dims (keeps the tiled (8,128) layout of the last two dims).
        if cols >= 64 and _SUBLANES * cols * itemsize <= 2 * _TARGET_BLOCK_BYTES:
            rows = x.size // cols
            return x.reshape(rows, cols)
    # Fallback (tiny / awkward trailing dim): explicit lane-dense repack.
    # This is a real relayout pass, accepted only because lane-sparse vregs
    # would be worse for cols < 64.
    flat = jnp.ravel(x)
    rem = flat.shape[0] % _LANES
    if rem:
        flat = jnp.pad(flat, (0, _LANES - rem))   # |0|**0.2 == 0, divisor uses true size
    return flat.reshape(-1, _LANES)


def _make_kernel(tile_rows: int, n_rows: int, n_cols: int,
                 blocks_per_core: int, n_blocks: int, total_steps: int,
                 acc_rows: int, compute_dtype):
    # Static: can any out-of-range row ever be visible to a block?
    needs_mask = (n_rows % tile_rows != 0) or (total_steps != n_blocks)
    groups = tile_rows // acc_rows

    def kernel(x_ref, o_ref, acc_ref):
        c = pl.program_id(0)   # core split ("parallel")
        i = pl.program_id(1)   # streaming step ("arbitrary")

        @pl.when(i == 0)
        def _():
            acc_ref[...] = jnp.zeros_like(acc_ref)

        x = x_ref[...]
        xa = jnp.abs(x).astype(compute_dtype)
        # |x|**0.2 == exp(0.2 * log|x|); exp(-inf) == 0 handles x == 0 exactly.
        contrib = jnp.exp(POWER * jnp.log(xa)).astype(jnp.float32)

        def accumulate(vals):
            # Fold the (tile_rows, cols) tile into the fixed (acc_rows, cols)
            # accumulator: pure VPU adds, no cross-lane work in the hot loop.
            acc_ref[...] += vals.reshape(groups, acc_rows, n_cols).sum(axis=0)

        if needs_mask:
            blk = c * blocks_per_core + i

            # Only the last real block (ragged tail) and any idle clamped step
            # need the row mask; steady-state steps skip it entirely.
            @pl.when(blk >= n_blocks - 1)
            def _():
                row = blk * tile_rows + jax.lax.broadcasted_iota(
                    jnp.int32, (tile_rows, 1), 0)
                # Select (not multiply) so OOB garbage/NaN can never leak in.
                accumulate(jnp.where(row < n_rows, contrib, 0.0))

            @pl.when(blk < n_blocks - 1)
            def _():
                accumulate(contrib)
        else:
            accumulate(contrib)

        @pl.when(i == pl.num_programs(1) - 1)
        def _():
            # One small cross-lane/sublane reduce per core, outside steady state.
            o_ref[0, 0] = jnp.sum(acc_ref[...])

    return kernel


def sparsity_loss(kernel: jax.Array, *,
                  target_block_bytes: int = _TARGET_BLOCK_BYTES) -> jax.Array:
    """mean(|kernel|**0.2), computed with a Pallas TPU streaming reduction."""
    n_elems = kernel.size
    x2d = _as_2d_view(kernel)
    rows, cols = x2d.shape

    if rows < _SUBLANES:
        # Tiny input: pad rows so the minimum (8, cols) block exists.
        # Padded zeros contribute exp(-inf) == 0; divisor uses the true size.
        x2d = jnp.pad(x2d, ((0, _SUBLANES - rows), (0, 0)))
        rows = _SUBLANES

    itemsize = x2d.dtype.itemsize
    # Streaming tile height: ~target_block_bytes per block, multiple of 8
    # sublanes, never exceeding the array (so no block starts out of bounds).
    tr = max(_SUBLANES,
             (target_block_bytes // (cols * itemsize)) // _SUBLANES * _SUBLANES)
    tr = min(tr, rows // _SUBLANES * _SUBLANES)

    n_blocks = pl.cdiv(rows, tr)
    n_cores = min(_num_tensorcores(), n_blocks)
    bpc = pl.cdiv(n_blocks, n_cores)
    total_steps = n_cores * bpc

    if total_steps == n_blocks:
        x_index_map = lambda c, i: (c * bpc + i, 0)
    else:
        # Idle trailing step re-reads the last valid block; it is fully masked
        # to zero inside the kernel.
        x_index_map = lambda c, i: (jnp.minimum(c * bpc + i, n_blocks - 1), 0)

    if jnp.issubdtype(x2d.dtype, jnp.floating) and x2d.dtype.itemsize <= 2:
        compute_dtype = jnp.bfloat16   # bf16 EUP path; accumulation stays f32
    else:
        compute_dtype = jnp.float32

    partials = pl.pallas_call(
        _make_kernel(tr, rows, cols, bpc, n_blocks, total_steps,
                     _ACC_ROWS, compute_dtype),
        out_shape=jax.ShapeDtypeStruct((n_cores, 1), jnp.float32),
        grid=(n_cores, bpc),
        in_specs=[pl.BlockSpec((tr, cols), x_index_map)],
        out_specs=pl.BlockSpec((1, 1), lambda c, i: (c, 0),
                               memory_space=pltpu.SMEM),
        scratch_shapes=[pltpu.VMEM((_ACC_ROWS, cols), jnp.float32)],
        compiler_params=pltpu.CompilerParams(
            dimension_semantics=("parallel", "arbitrary"),
        ),
    )(x2d)

    return jnp.sum(partials) / jnp.float32(n_elems)


def sparsity_loss_ref(kernel: jax.Array) -> jax.Array:
    """Pure-JAX reference (matches torch.nn.L1Loss(|x|**0.2, zeros))."""
    return jnp.mean(jnp.abs(kernel.astype(jnp.float32)) ** POWER)


if __name__ == "__main__":
    key = jax.random.PRNGKey(0)
    k0, k1, k2, k3 = jax.random.split(key, 4)

    # Small conv-kernel-like tensor (tiny trailing dim -> lane-dense repack path).
    x = jax.random.normal(k0, (2, 4, 16, 16), dtype=jnp.float32)
    out = jax.block_until_ready(sparsity_loss(x))
    ref = sparsity_loss_ref(x)
    assert jnp.allclose(out, ref, rtol=1e-4, atol=1e-6), (out, ref)

    # Ragged rows + multi-block streaming (tiny blocks to force mask/clamp paths).
    y = jax.random.normal(k1, (3, 5, 17, 13), dtype=jnp.float32)
    out2 = jax.block_until_ready(sparsity_loss(y, target_block_bytes=4096))
    ref2 = sparsity_loss_ref(y)
    assert jnp.allclose(out2, ref2, rtol=1e-4, atol=1e-6), (out2, ref2)

    # Wide trailing dim -> relayout-free leading-dim collapse path.
    z = jax.random.normal(k2, (4, 8, 256), dtype=jnp.float32)
    out3 = jax.block_until_ready(sparsity_loss(z))
    ref3 = sparsity_loss_ref(z)
    assert jnp.allclose(out3, ref3, rtol=1e-4, atol=1e-6), (out3, ref3)

    # bf16 input exercises the bf16 transcendental path (f32 accumulation);
    # per-element |x|^0.2 error is ~0.3% by design, so use a loose tolerance.
    w = jax.random.normal(k3, (4, 128), dtype=jnp.float32).astype(jnp.bfloat16)
    out4 = jax.block_until_ready(sparsity_loss(w))
    ref4 = sparsity_loss_ref(w)
    assert jnp.allclose(out4, ref4, rtol=2e-2, atol=1e-3), (out4, ref4)

    print("KERNEL_OK")
</pallas_src>

<mosaic_0001>
module attributes {stable_mosaic.version = 11 : i64} {
  func.func @kernel(%arg0: i32, %arg1: i32, %arg2: memref<16x128xf32, #tpu.memory_space<vmem>>, %arg3: memref<1x1xf32, #tpu.memory_space<smem>>, %arg4: memref<8x128xf32, #tpu.memory_space<vmem>>) attributes {dimension_semantics = [#tpu.dimension_semantics<parallel>, #tpu.dimension_semantics<arbitrary>], iteration_bounds = array<i64: 1, 1>, scalar_prefetch = 0 : i64, scratch_operands = 1 : i64, tpu.core_type = #tpu.core_type<tc>, window_params = [{transform_indices = @transform_0, window_bounds = array<i64: 16, 128>}, {transform_indices = @transform_1, window_bounds = array<i64: 1, 1>}]} {
    %c0_i32 = arith.constant 0 : i32
    %0 = arith.cmpi eq, %arg1, %c0_i32 : i32
    %1 = arith.extui %0 : i1 to i32
    %c0_i32_0 = arith.constant 0 : i32
    %2 = arith.cmpi ne, %1, %c0_i32_0 : i32
    scf.if %2 {
      %cst_9 = arith.constant 0.000000e+00 : f32
      %17 = vector.broadcast %cst_9 : f32 to vector<8x128xf32>
      %c0_10 = arith.constant 0 : index
      %c0_11 = arith.constant 0 : index
      %18 = vector.load %arg4[%c0_10, %c0_11] : memref<8x128xf32, #tpu.memory_space<vmem>>, vector<8x128xf32>
      tpu.vector_store %arg4[%c0_10, %c0_11], %17 {strides = array<i32>} : memref<8x128xf32, #tpu.memory_space<vmem>>, vector<8x128xf32>,
    } else {
    }
    %c0 = arith.constant 0 : index
    %c0_1 = arith.constant 0 : index
    %3 = vector.load %arg2[%c0, %c0_1] : memref<16x128xf32, #tpu.memory_space<vmem>>, vector<16x128xf32>
    %4 = math.absf %3 : vector<16x128xf32>
    %5 = math.log %4 : vector<16x128xf32>
    %cst = arith.constant 2.000000e-01 : f32
    %6 = vector.broadcast %cst : f32 to vector<16x128xf32>
    %7 = arith.mulf %6, %5 : vector<16x128xf32>
    %8 = math.exp %7 : vector<16x128xf32>
    %c0_2 = arith.constant 0 : index
    %c0_3 = arith.constant 0 : index
    %9 = vector.load %arg4[%c0_2, %c0_3] : memref<8x128xf32, #tpu.memory_space<vmem>>, vector<8x128xf32>
    %10 = vector.shape_cast %8 : vector<16x128xf32> to vector<2x8x128xf32>
    %cst_4 = arith.constant dense<0.000000e+00> : vector<8x128xf32>
    %11 = vector.multi_reduction <add>, %10, %cst_4 [0] : vector<2x8x128xf32> to vector<8x128xf32>
    %12 = arith.addf %9, %11 : vector<8x128xf32>
    %c0_5 = arith.constant 0 : index
    %c0_6 = arith.constant 0 : index
    %13 = vector.load %arg4[%c0_5, %c0_6] : memref<8x128xf32, #tpu.memory_space<vmem>>, vector<8x128xf32>
    tpu.vector_store %arg4[%c0_5, %c0_6], %12 {strides = array<i32>} : memref<8x128xf32, #tpu.memory_space<vmem>>, vector<8x128xf32>,
    %c0_i32_7 = arith.constant 0 : i32
    %14 = arith.cmpi eq, %arg1, %c0_i32_7 : i32
    %15 = arith.extui %14 : i1 to i32
    %c0_i32_8 = arith.constant 0 : i32
    %16 = arith.cmpi ne, %15, %c0_i32_8 : i32
    scf.if %16 {
      %c0_9 = arith.constant 0 : index
      %c0_10 = arith.constant 0 : index
      %17 = vector.load %arg4[%c0_9, %c0_10] : memref<8x128xf32, #tpu.memory_space<vmem>>, vector<8x128xf32>
      %18 = vector.shape_cast %17 : vector<8x128xf32> to vector<1x8x128xf32>
      %cst_11 = arith.constant dense<0.000000e+00> : vector<1xf32>
      %19 = vector.multi_reduction <add>, %18, %cst_11 [1, 2] : vector<1x8x128xf32> to vector<1xf32>
      %20 = vector.shape_cast %19 : vector<1xf32> to vector<1x1x1xf32>
      %21 = vector.extract %20[0, 0, 0] : f32 from vector<1x1x1xf32>
      %c0_12 = arith.constant 0 : index
      %c0_13 = arith.constant 0 : index
      %22 = memref.load %arg3[%c0_12, %c0_13] : memref<1x1xf32, #tpu.memory_space<smem>>
      memref.store %21, %arg3[%c0_12, %c0_13] : memref<1x1xf32, #tpu.memory_space<smem>>
    } else {
    }
    return
  }
  func.func @transform_0(%arg0: i32, %arg1: i32) -> (i32, i32) {
    %c1_i32 = arith.constant 1 : i32
    %0 = arith.muli %arg0, %c1_i32 : i32
    %1 = arith.addi %0, %arg1 : i32
    %c0_i32 = arith.constant 0 : i32
    %c0_i32_0 = arith.constant 0 : i32
    return %1, %c0_i32 : i32, i32
  }
  func.func @transform_1(%arg0: i32, %arg1: i32) -> (i32, i32) {
    %c0_i32 = arith.constant 0 : i32
    %c0_i32_0 = arith.constant 0 : i32
    return %arg0, %c0_i32 : i32, i32
  }
}

</mosaic_0001>

<bundles_post_ra>
// kernel: tpu_custom_call.1
= control target key start
LH: loop header
LB: loop body
LE: loop exit
PB: predicated region body
PF: predicated region fallthrough
CT: control target
= control target key end

     0   :  { %6 = vsyncpa [#allocation4], 0  ;;  %s169_s0 = inlined_call_operand.hbm [shape: f32[16,128], index: 0, kind: input, shape index: {}]   ;;  %s170_s1 = inlined_call_operand.hbm [shape: f32[1,1], index: 1, kind: output, shape index: {}]  }
   0x1   :  { %7 = vsyncpa [#allocation5], 0  ;;  %s131_s6 = smov [#allocation3]   ;;  %s95_s10 = scalar_lea.hbm %s169_s0, 256 }
   0x2   :  { %s17_s7 = sshll.u32 %s131_s6, 4  ;;  %p96_p0 = scmp.ne.s32.totalorder %s169_s0, %s95_s10  ;;  %s18_s7 = int_to_ptr.vmem [resolvable:$true] %s17_s7 }
   0x3   :  { %p99_p1 = scmp.lt.u32.totalorder %s95_s10, %s169_s0 }
   0x5   :  { %p101_p2 = pnand %p99_p1, %p96_p0 }
   0x7   :  { %104 = shalt.err (!%p101_p2)
}
   0x8   :  { %s105_s15 = scalar_lea.vmem %s18_s7, 256  ;;  %p110_p4 = scmp.lt.s32.totalorder %s18_s7, %s18_s7 }
   0x9   :  { %p106_p3 = scmp.ne.s32.totalorder %s18_s7, %s105_s15  ;;  %p111_p5 = scmp.lt.s32.totalorder %s105_s15, %s105_s15 }
   0xb   :  { %p112_p6 = por %p111_p5, %p110_p4 }
   0xd   :  { %p113_p7 = pnand %p112_p6, %p106_p3 }
   0xf   :  { %116 = shalt.err (!%p113_p7)
}
  0x10   :  { %s132_s16 = smov 128   ;;  %s133_s17 = smov 8  }
  0x11   :  { %23 = dma.hbm_to_vmem [thread:$0]  %s169_s0, 256, %s18_s7, [#allocation4], %s132_s16, %s132_s16, %s133_s17  }
  0x12   :  { %127 = dma.done.wait [#allocation4], 256  }
  0x13   :  { %128 = vsyncadd [#allocation4], 4294967040  ;;  %v34_v0 = vld [vmem:[#allocation3] sm:$0xff]  ;;  %v35_v1 = vld [vmem:[#allocation3 + $0x8] sm:$0xff]  ;;  %s117_s22 = scalar_lea.hbm %s170_s1, 16 }
  0x14   :  { %v36_v2 = vand.u32 2147483647, %v34_v0  ;;  %v37_v3 = vand.u32 2147483647, %v35_v1  ;;  %p118_p8 = scmp.ne.s32.totalorder %s170_s1, %s117_s22  ;;  %p121_p9 = scmp.lt.u32.totalorder %s117_s22, %s170_s1 }
  0x16   :  { %87 = vlog2.f32 %v36_v2  ;;  %p123_p10 = pnand %p121_p9, %p118_p8 }
  0x17   :  { %89 = vlog2.f32 %v37_v3 }
  0x20   :  { %v88_v4 = vpop.eup %87 }
  0x21   :  { %v90_v5 = vpop.eup %89  ;;  %v39_v6 = vmul.f32 0.6931472, %v88_v4 }
  0x22   :  { %v41_v7 = vmul.f32 0.6931472, %v90_v5 }
  0x23   :  { %v42_v8 = vmul.f32 0.2, %v39_v6 }
  0x24   :  { %v43_v9 = vmul.f32 0.2, %v41_v7 }
  0x25   :  { %v44_v10 = vmul.f32 1.442695, %v42_v8 }
  0x26   :  { %v46_v11 = vmul.f32 1.442695, %v43_v9 }
  0x27   :  { %91 = vpow2.f32 %v44_v10 }
  0x28   :  { %93 = vpow2.f32 %v46_v11 }
  0x31   :  { %v92_v12 = vpop.eup %91 }
  0x32   :  { %v94_v13 = vpop.eup %93 }
  0x33   :  { %v49_v14 = vadd.f32 %v94_v13, %v92_v12 }
  0x35   :  { %56 = vadd.xlane.f32.xlu0 %v49_v14 }
  0xc2   :  { %v57_v15 = vpop.xlane.xlu0 %56 }
  0xc3   :  { %v58_v16 = vrot.slane %v57_v15, 4 }
  0xc5   :  { %v59_v17 = vadd.f32 %v58_v16, %v57_v15 }
  0xc7   :  { %v60_v18 = vrot.slane %v59_v17, 2 }
  0xc9   :  { %v61_v19 = vadd.f32 %v60_v18, %v59_v17 }
  0xcb   :  { %v62_v20 = vrot.slane %v61_v19, 1 }
  0xcd   :  { %v63_v21 = vadd.f32 %v62_v20, %v61_v19 }
  0xcf   :  { %81 = vpush %v63_v21 }
 0x100   :  { %s82_s0 = spop %81 }
 0x101   :  { %66 = sst [smem:[#allocation6]] %s82_s0 }
 0x102   :  { %126 = shalt.err (!%p123_p10)
}
 0x103   :  { %s134_s27 = smov [#allocation6]  }
 0x104   :  { %74 = dma.smem_to_hbm %s134_s27, 16, %s170_s1, [#allocation5]  }
 0x105   :  { %129 = dma.done.wait [#allocation5], 16  }
 0x106   :  { %130 = vsyncadd [#allocation5], 4294967280 }
 0x107   :  { %78 = sfence }
 0x108   :  { %79 = vsyncpa [#allocation4], 1 }
 0x109   :  { %80 = vsyncpa [#allocation5], 1 }

</bundles_post_ra>
